<compile_context>
chip_gen: v7x
topology: tpu7x:2x2x1
jax: 0.10.0
libtpu: 0.0.40
codegen_flags: <defaults>
</compile_context>

<pallas_src>
import functools

import jax
import jax.numpy as jnp
from jax.experimental import pallas as pl
from jax.experimental.pallas import tpu as pltpu


def _round_up(x, m):
    return ((x + m - 1) // m) * m


def _cdiv(a, b):
    return (a + b - 1) // b


def _buf_bytes(shape, itemsize):
    """VMEM bytes of one buffer with (sublane, lane) layout padding."""
    lanes = _round_up(shape[-1], 128)
    sub = _round_up(shape[-2], 16 if itemsize == 2 else 8)
    lead = 1
    for d in shape[:-2]:
        lead *= d
    return lead * sub * lanes * itemsize


def _vmem_limit(nbytes):
    # ~1.5x estimated need + fixed headroom for Mosaic internal scratch.
    # No blanket 32 MiB floor; cap at 48 MiB so v7x (64 MiB physical VMEM)
    # keeps room for internal scratch / semaphores / surrounding ops.
    return int(min(48 * 2**20, max(8 * 2**20, int(1.5 * nbytes) + (2 << 20))))


# -----------------------------------------------------------------------------
# Fused per-layer kernel (grid over dst tiles, "parallel").
#   Stage 1 (recomputed per dst tile; FLOPs are tiny vs stage 2 and this avoids
#            a second pallas_call + an HBM round trip for Y_cat):
#       Y_cat[r*Ns_pad + s, :] = (X @ W_r)[s, :]        (bf16 VMEM scratch)
#   Stage 2 (single lane-dense MXU matmul, K = R*Ns_pad):
#       H_tile = (A_tile @ Y_cat) * inv_deg + bias  (+ ReLU)
# -----------------------------------------------------------------------------
def _rgcn_layer_kernel(a_ref, x_ref, w_ref, b_ref, s_ref, o_ref, y_ref, *,
                       apply_relu, num_rels, ns_pad, k_pad):
    for r in range(num_rels):                      # static, unrolled, small R
        y_ref[r * ns_pad:(r + 1) * ns_pad, :] = jnp.dot(
            x_ref[...], w_ref[r],
            preferred_element_type=jnp.float32).astype(y_ref.dtype)
    if k_pad > num_rels * ns_pad:
        # A's padded K columns are zero; zero the matching Y rows so that
        # uninitialized VMEM (possible NaN bit patterns) never reaches the MXU.
        y_ref[num_rels * ns_pad:, :] = jnp.zeros(
            (k_pad - num_rels * ns_pad, y_ref.shape[-1]), y_ref.dtype)

    h = jnp.dot(a_ref[...], y_ref[...], preferred_element_type=jnp.float32)
    h = h * s_ref[...] + b_ref[...]        # f32 edge-norm row scale + bias (VPU)
    if apply_relu:
        h = jnp.maximum(h, 0.0)
    o_ref[...] = h.astype(o_ref.dtype)


def rel_graph_conv_fused(edges, num_src, num_dst, X, W, bias, *,
                         apply_relu, tile_d_max=256):
    """One RelGraphConv layer (basis-combined weights W).

    edges: (src, dst, etype, norm) with norm = 1/in_degree(dst) (DGL
           entity_sample convention -> a pure per-dst row scale).
    X:     (num_src, Dx) source features; columns beyond W.shape[1] must be
           zero (lane padding carried from the previous layer).
    W:     (R, Di, Do) combined relation weights (Di <= Dx).
    bias:  (Do,)
    Returns (num_dst, Do_pad) f32 with Do padded to a multiple of 128.  The
    padded columns are exactly zero (zero-padded W columns + zero-padded bias
    + ReLU(0)=0), which is the invariant that lets layers chain without
    slicing until the very end.
    """
    src, dst, etype, norm = edges
    R, Di, Do = W.shape
    Dx = X.shape[1]
    assert Di <= Dx

    f32, bf16 = jnp.float32, jnp.bfloat16

    Do_pad = _round_up(Do, 128)                  # lane-dense output slab
    Ns_pad = _round_up(max(num_src, 16), 16)     # bf16 sublane packing
    K = R * Ns_pad
    K_pad = _round_up(K, 128)                    # MXU contraction dim

    # dst tiling: >= 2 grid steps whenever there are >= 32 padded rows so the
    # "parallel" axis lands on both v7x TensorCores (no-op on v5e/v6e: 1 TC).
    # TODO(synk): raise tile_d_max to 512 on v5e/v6e (128 MiB VMEM) for large Nd.
    Nd16 = _round_up(max(num_dst, 16), 16)
    tile_d = min(tile_d_max, _round_up(_cdiv(Nd16, 2), 16))
    Nd_pad = _round_up(Nd16, tile_d)
    n_dt = Nd_pad // tile_d

    # ---- wrapper-side operand prep (single scatter, no transpose copy) ------
    # A_cat[d, r*Ns_pad + s] = #edges (src=s -> dst=d, etype=r): exact small
    # integers, safe in bf16.  The edge norm stays f32 as a per-row scale.
    # TODO(synk): for real sparse graphs replace the dense slab with a CSR /
    # scalar-prefetch gather path; dense A is 10-40x redundant HBM traffic.
    cols = etype.astype(jnp.int32) * Ns_pad + src.astype(jnp.int32)
    A_cat = jnp.zeros((Nd_pad, K_pad), bf16).at[dst, cols].add(
        jnp.ones(src.shape, bf16))
    inv_deg = jnp.zeros((Nd_pad, 1), f32).at[dst, 0].max(norm.astype(f32))

    Xp = jnp.zeros((Ns_pad, Dx), bf16).at[:num_src, :].set(
        X[:num_src].astype(bf16))
    Wp = jnp.zeros((R, Dx, Do_pad), bf16).at[:, :Di, :Do].set(W.astype(bf16))
    bp = jnp.zeros((1, Do_pad), f32).at[0, :Do].set(bias.astype(f32))

    # ---- VMEM budget: double-buffered pipelined operands + Y_cat scratch ----
    need = 2 * (_buf_bytes((tile_d, K_pad), 2)
                + _buf_bytes((Ns_pad, Dx), 2)
                + _buf_bytes((R, Dx, Do_pad), 2)
                + _buf_bytes((1, Do_pad), 4)
                + _buf_bytes((tile_d, 1), 4)
                + _buf_bytes((tile_d, Do_pad), 4)) \
        + _buf_bytes((K_pad, Do_pad), 2)
    # TODO(synk): for large Ns add a K ("arbitrary") grid axis + f32 accumulator
    # scratch (needed under v7x's 64 MiB VMEM), and mark the resident X/W/bias
    # specs pipeline_mode=pl.Buffered(1) once single-buffering is confirmed
    # supported, to halve their VMEM footprint.

    kernel = functools.partial(
        _rgcn_layer_kernel, apply_relu=apply_relu, num_rels=R,
        ns_pad=Ns_pad, k_pad=K_pad)

    H = pl.pallas_call(
        kernel,
        out_shape=jax.ShapeDtypeStruct((Nd_pad, Do_pad), f32),
        grid_spec=pltpu.PrefetchScalarGridSpec(
            num_scalar_prefetch=0,
            grid=(n_dt,),
            in_specs=[
                pl.BlockSpec((tile_d, K_pad), lambda d: (d, 0)),     # A tile
                pl.BlockSpec((Ns_pad, Dx), lambda d: (0, 0)),        # X (resident)
                pl.BlockSpec((R, Dx, Do_pad), lambda d: (0, 0, 0)),  # W (resident)
                pl.BlockSpec((1, Do_pad), lambda d: (0, 0)),         # bias
                pl.BlockSpec((tile_d, 1), lambda d: (d, 0)),         # inv_deg tile
            ],
            out_specs=pl.BlockSpec((tile_d, Do_pad), lambda d: (d, 0)),
            scratch_shapes=[pltpu.VMEM((K_pad, Do_pad), bf16)],      # Y_cat
        ),
        compiler_params=pltpu.CompilerParams(
            dimension_semantics=("parallel",),
            vmem_limit_bytes=_vmem_limit(need),
        ),
        cost_estimate=pl.CostEstimate(
            flops=2 * n_dt * R * Ns_pad * Dx * Do_pad
                  + 2 * Nd_pad * K_pad * Do_pad,
            transcendentals=0,
            bytes_accessed=2 * (Nd_pad * K_pad + Ns_pad * Dx + R * Dx * Do_pad)
                           + 4 * (Nd_pad * Do_pad + Nd_pad + Do_pad),
        ),
    )(A_cat, Xp, Wp, bp, inv_deg)

    return H[:num_dst]   # keep lane-padded columns; slice after the last layer


# -----------------------------------------------------------------------------
# Glue (plain JAX): basis weight combination and the embedding gather — model
# setup / gather, not the matmul hot path.
# -----------------------------------------------------------------------------
def basis_weights(comp, V):
    # comp: (num_rels, num_bases), V: (num_bases, in_feat, out_feat)
    return jnp.einsum("rb,bio->rio", comp, V)


def rgcn_forward(params, block0, block1):
    emb, comp1, V1, b1, comp2, V2, b2 = params
    (src0, dst0, et0, nrm0, src_nids, n_src0, n_dst0) = block0
    (src1, dst1, et1, nrm1, n_src1, n_dst1) = block1
    out_dim = V2.shape[2]

    # x = self.emb(g[0].srcdata[dgl.NID]) -- embedding gather (plain JAX glue)
    x = jnp.take(emb, src_nids, axis=0)
    W1 = basis_weights(comp1, V1)
    W2 = basis_weights(comp2, V2)

    h = rel_graph_conv_fused((src0, dst0, et0, nrm0), n_src0, n_dst0,
                             x, W1, b1, apply_relu=True)    # (n_dst0, 128) slab
    h = rel_graph_conv_fused((src1, dst1, et1, nrm1), n_src1, n_dst1,
                             h, W2, b2, apply_relu=False)   # (n_dst1, 128) slab
    return h[:, :out_dim]                                   # slice lane pad once


# -----------------------------------------------------------------------------
# Pure-JAX f32 reference for the correctness check.
# -----------------------------------------------------------------------------
def _dense_rel_adjacency_ref(src, dst, etype, norm, num_rels, num_dst, num_src):
    A = jnp.zeros((num_rels, num_dst, num_src), dtype=jnp.float32)
    return A.at[etype, dst, src].add(norm)


def _reference_forward(params, block0, block1):
    emb, comp1, V1, b1, comp2, V2, b2 = params
    (src0, dst0, et0, nrm0, src_nids, n_src0, n_dst0) = block0
    (src1, dst1, et1, nrm1, n_src1, n_dst1) = block1
    num_rels = comp1.shape[0]
    x = jnp.take(emb, src_nids, axis=0)
    W1 = basis_weights(comp1, V1)
    W2 = basis_weights(comp2, V2)
    A1 = _dense_rel_adjacency_ref(src0, dst0, et0, nrm0, num_rels, n_dst0, n_src0)
    A2 = _dense_rel_adjacency_ref(src1, dst1, et1, nrm1, num_rels, n_dst1, n_src1)
    h = jnp.einsum("rds,sf->rdf", A1, x)
    h = jnp.einsum("rdf,rfo->do", h, W1) + b1
    h = jnp.maximum(h, 0.0)
    h2 = jnp.einsum("rds,sf->rdf", A2, h)
    h2 = jnp.einsum("rdf,rfo->do", h2, W2) + b2
    return h2


# -----------------------------------------------------------------------------
if __name__ == "__main__":
    key = jax.random.PRNGKey(0)

    # Small, forward-consistent shapes.
    num_nodes = 100
    h_dim = 32
    out_dim = 16
    num_rels = 4
    num_bases = num_rels

    n_src0, n_dst0 = 64, 32   # block 0: 64 src -> 32 dst
    n_src1, n_dst1 = 32, 16   # block 1: 32 src (= block0 dst) -> 16 dst
    E0, E1 = 200, 100

    keys = jax.random.split(key, 16)

    # Parameters (deterministic init).
    emb = jax.random.normal(keys[0], (num_nodes, h_dim), dtype=jnp.float32) * 0.1
    comp1 = jax.random.normal(keys[1], (num_rels, num_bases), dtype=jnp.float32) * 0.2
    V1 = jax.random.normal(keys[2], (num_bases, h_dim, h_dim), dtype=jnp.float32) * 0.1
    b1 = jnp.zeros((h_dim,), dtype=jnp.float32)   # DGL initializes h_bias to zeros
    comp2 = jax.random.normal(keys[3], (num_rels, num_bases), dtype=jnp.float32) * 0.2
    V2 = jax.random.normal(keys[4], (num_bases, h_dim, out_dim), dtype=jnp.float32) * 0.1
    b2 = jnp.zeros((out_dim,), dtype=jnp.float32)
    params = (emb, comp1, V1, b1, comp2, V2, b2)

    # Synthetic sampled blocks (DGL-style): src ids, dst ids, etype, edge norm.
    src_nids = jax.random.permutation(keys[5], num_nodes)[:n_src0]  # global IDs

    src0 = jax.random.randint(keys[6], (E0,), 0, n_src0)
    dst0 = jax.random.randint(keys[7], (E0,), 0, n_dst0)
    et0 = jax.random.randint(keys[8], (E0,), 0, num_rels)
    deg0 = jnp.zeros((n_dst0,), jnp.float32).at[dst0].add(1.0)
    nrm0 = 1.0 / jnp.maximum(deg0[dst0], 1.0)                        # 1/in_degree

    src1 = jax.random.randint(keys[9], (E1,), 0, n_src1)
    dst1 = jax.random.randint(keys[10], (E1,), 0, n_dst1)
    et1 = jax.random.randint(keys[11], (E1,), 0, num_rels)
    deg1 = jnp.zeros((n_dst1,), jnp.float32).at[dst1].add(1.0)
    nrm1 = 1.0 / jnp.maximum(deg1[dst1], 1.0)

    block0 = (src0, dst0, et0, nrm0, src_nids, n_src0, n_dst0)
    block1 = (src1, dst1, et1, nrm1, n_src1, n_dst1)

    out = rgcn_forward(params, block0, block1)
    out = jax.block_until_ready(out)

    ref = jax.block_until_ready(_reference_forward(params, block0, block1))
    assert out.shape == (n_dst1, out_dim) and out.dtype == jnp.float32
    # bf16 MXU feed (X, W, Y_cat) with f32 accumulation; edge norms stay f32,
    # so tolerances are tighter than the previous (bf16-norm) version.
    assert jnp.allclose(out, ref, atol=2e-3, rtol=2e-2), "Pallas output mismatch"

    print("KERNEL_OK")
</pallas_src>

<mosaic_0001>
module attributes {stable_mosaic.version = 11 : i64} {
  func.func @_rgcn_layer_kernel(%arg0: i32, %arg1: memref<16x256xbf16, #tpu.memory_space<vmem>>, %arg2: memref<64x32xbf16, #tpu.memory_space<vmem>>, %arg3: memref<4x32x128xbf16, #tpu.memory_space<vmem>>, %arg4: memref<1x128xf32, #tpu.memory_space<vmem>>, %arg5: memref<16x1xf32, #tpu.memory_space<vmem>>, %arg6: memref<16x128xf32, #tpu.memory_space<vmem>>, %arg7: memref<256x128xbf16, #tpu.memory_space<vmem>>) attributes {dimension_semantics = [#tpu.dimension_semantics<parallel>], iteration_bounds = array<i64: 2>, scalar_prefetch = 0 : i64, scratch_operands = 1 : i64, tpu.core_type = #tpu.core_type<tc>, window_params = [{transform_indices = @transform_0, window_bounds = array<i64: 16, 256>}, {pipeline_mode = #tpu.pipeline_mode<synchronous>, transform_indices = @transform_1, window_bounds = array<i64: 64, 32>}, {pipeline_mode = #tpu.pipeline_mode<synchronous>, transform_indices = @transform_2, window_bounds = array<i64: 4, 32, 128>}, {pipeline_mode = #tpu.pipeline_mode<synchronous>, transform_indices = @transform_3, window_bounds = array<i64: 1, 128>}, {transform_indices = @transform_4, window_bounds = array<i64: 16, 1>}, {transform_indices = @transform_5, window_bounds = array<i64: 16, 128>}]} {
    %c0 = arith.constant 0 : index
    %c0_0 = arith.constant 0 : index
    %0 = vector.load %arg2[%c0, %c0_0] : memref<64x32xbf16, #tpu.memory_space<vmem>>, vector<64x32xbf16>
    %c0_1 = arith.constant 0 : index
    %c0_2 = arith.constant 0 : index
    %c0_3 = arith.constant 0 : index
    %1 = vector.load %arg3[%c0_1, %c0_2, %c0_3] : memref<4x32x128xbf16, #tpu.memory_space<vmem>>, vector<1x32x128xbf16>
    %2 = vector.shape_cast %1 : vector<1x32x128xbf16> to vector<32x128xbf16>
    %cst = arith.constant dense<0.000000e+00> : vector<64x128xf32>
    %3 = tpu.matmul %0, %2, %cst {dimension_numbers = #tpu.dot_dimension_numbers<[1], [0], [0], [1], [0, 0, 1, 1], [], []>} : vector<64x32xbf16>, vector<32x128xbf16>, vector<64x128xf32> -> vector<64x128xf32>
    %4 = arith.truncf %3 : vector<64x128xf32> to vector<64x128xbf16>
    %c0_4 = arith.constant 0 : index
    %c0_5 = arith.constant 0 : index
    %5 = vector.load %arg7[%c0_4, %c0_5] : memref<256x128xbf16, #tpu.memory_space<vmem>>, vector<64x128xbf16>
    tpu.vector_store %arg7[%c0_4, %c0_5], %4 {strides = array<i32>} : memref<256x128xbf16, #tpu.memory_space<vmem>>, vector<64x128xbf16>,
    %c0_6 = arith.constant 0 : index
    %c0_7 = arith.constant 0 : index
    %6 = vector.load %arg2[%c0_6, %c0_7] : memref<64x32xbf16, #tpu.memory_space<vmem>>, vector<64x32xbf16>
    %c1 = arith.constant 1 : index
    %c0_8 = arith.constant 0 : index
    %c0_9 = arith.constant 0 : index
    %7 = vector.load %arg3[%c1, %c0_8, %c0_9] : memref<4x32x128xbf16, #tpu.memory_space<vmem>>, vector<1x32x128xbf16>
    %8 = vector.shape_cast %7 : vector<1x32x128xbf16> to vector<32x128xbf16>
    %cst_10 = arith.constant dense<0.000000e+00> : vector<64x128xf32>
    %9 = tpu.matmul %6, %8, %cst_10 {dimension_numbers = #tpu.dot_dimension_numbers<[1], [0], [0], [1], [0, 0, 1, 1], [], []>} : vector<64x32xbf16>, vector<32x128xbf16>, vector<64x128xf32> -> vector<64x128xf32>
    %10 = arith.truncf %9 : vector<64x128xf32> to vector<64x128xbf16>
    %c64 = arith.constant 64 : index
    %c0_11 = arith.constant 0 : index
    %11 = vector.load %arg7[%c64, %c0_11] : memref<256x128xbf16, #tpu.memory_space<vmem>>, vector<64x128xbf16>
    tpu.vector_store %arg7[%c64, %c0_11], %10 {strides = array<i32>} : memref<256x128xbf16, #tpu.memory_space<vmem>>, vector<64x128xbf16>,
    %c0_12 = arith.constant 0 : index
    %c0_13 = arith.constant 0 : index
    %12 = vector.load %arg2[%c0_12, %c0_13] : memref<64x32xbf16, #tpu.memory_space<vmem>>, vector<64x32xbf16>
    %c2 = arith.constant 2 : index
    %c0_14 = arith.constant 0 : index
    %c0_15 = arith.constant 0 : index
    %13 = vector.load %arg3[%c2, %c0_14, %c0_15] : memref<4x32x128xbf16, #tpu.memory_space<vmem>>, vector<1x32x128xbf16>
    %14 = vector.shape_cast %13 : vector<1x32x128xbf16> to vector<32x128xbf16>
    %cst_16 = arith.constant dense<0.000000e+00> : vector<64x128xf32>
    %15 = tpu.matmul %12, %14, %cst_16 {dimension_numbers = #tpu.dot_dimension_numbers<[1], [0], [0], [1], [0, 0, 1, 1], [], []>} : vector<64x32xbf16>, vector<32x128xbf16>, vector<64x128xf32> -> vector<64x128xf32>
    %16 = arith.truncf %15 : vector<64x128xf32> to vector<64x128xbf16>
    %c128 = arith.constant 128 : index
    %c0_17 = arith.constant 0 : index
    %17 = vector.load %arg7[%c128, %c0_17] : memref<256x128xbf16, #tpu.memory_space<vmem>>, vector<64x128xbf16>
    tpu.vector_store %arg7[%c128, %c0_17], %16 {strides = array<i32>} : memref<256x128xbf16, #tpu.memory_space<vmem>>, vector<64x128xbf16>,
    %c0_18 = arith.constant 0 : index
    %c0_19 = arith.constant 0 : index
    %18 = vector.load %arg2[%c0_18, %c0_19] : memref<64x32xbf16, #tpu.memory_space<vmem>>, vector<64x32xbf16>
    %c3 = arith.constant 3 : index
    %c0_20 = arith.constant 0 : index
    %c0_21 = arith.constant 0 : index
    %19 = vector.load %arg3[%c3, %c0_20, %c0_21] : memref<4x32x128xbf16, #tpu.memory_space<vmem>>, vector<1x32x128xbf16>
    %20 = vector.shape_cast %19 : vector<1x32x128xbf16> to vector<32x128xbf16>
    %cst_22 = arith.constant dense<0.000000e+00> : vector<64x128xf32>
    %21 = tpu.matmul %18, %20, %cst_22 {dimension_numbers = #tpu.dot_dimension_numbers<[1], [0], [0], [1], [0, 0, 1, 1], [], []>} : vector<64x32xbf16>, vector<32x128xbf16>, vector<64x128xf32> -> vector<64x128xf32>
    %22 = arith.truncf %21 : vector<64x128xf32> to vector<64x128xbf16>
    %c192 = arith.constant 192 : index
    %c0_23 = arith.constant 0 : index
    %23 = vector.load %arg7[%c192, %c0_23] : memref<256x128xbf16, #tpu.memory_space<vmem>>, vector<64x128xbf16>
    tpu.vector_store %arg7[%c192, %c0_23], %22 {strides = array<i32>} : memref<256x128xbf16, #tpu.memory_space<vmem>>, vector<64x128xbf16>,
    %c0_24 = arith.constant 0 : index
    %c0_25 = arith.constant 0 : index
    %24 = vector.load %arg1[%c0_24, %c0_25] : memref<16x256xbf16, #tpu.memory_space<vmem>>, vector<16x256xbf16>
    %c0_26 = arith.constant 0 : index
    %c0_27 = arith.constant 0 : index
    %25 = vector.load %arg7[%c0_26, %c0_27] : memref<256x128xbf16, #tpu.memory_space<vmem>>, vector<256x128xbf16>
    %cst_28 = arith.constant dense<0.000000e+00> : vector<16x128xf32>
    %26 = tpu.matmul %24, %25, %cst_28 {dimension_numbers = #tpu.dot_dimension_numbers<[1], [0], [0], [1], [0, 0, 1, 1], [], []>} : vector<16x256xbf16>, vector<256x128xbf16>, vector<16x128xf32> -> vector<16x128xf32>
    %c0_29 = arith.constant 0 : index
    %c0_30 = arith.constant 0 : index
    %27 = vector.load %arg5[%c0_29, %c0_30] : memref<16x1xf32, #tpu.memory_space<vmem>>, vector<16x1xf32>
    %28 = vector.broadcast %27 : vector<16x1xf32> to vector<16x128xf32>
    %29 = arith.mulf %26, %28 : vector<16x128xf32>
    %c0_31 = arith.constant 0 : index
    %c0_32 = arith.constant 0 : index
    %30 = vector.load %arg4[%c0_31, %c0_32] : memref<1x128xf32, #tpu.memory_space<vmem>>, vector<1x128xf32>
    %31 = vector.broadcast %30 : vector<1x128xf32> to vector<16x128xf32>
    %32 = arith.addf %29, %31 : vector<16x128xf32>
    %cst_33 = arith.constant 0.000000e+00 : f32
    %33 = vector.broadcast %cst_33 : f32 to vector<16x128xf32>
    %34 = arith.maximumf %32, %33 : vector<16x128xf32>
    %c0_34 = arith.constant 0 : index
    %c0_35 = arith.constant 0 : index
    %35 = vector.load %arg6[%c0_34, %c0_35] : memref<16x128xf32, #tpu.memory_space<vmem>>, vector<16x128xf32>
    tpu.vector_store %arg6[%c0_34, %c0_35], %34 {strides = array<i32>} : memref<16x128xf32, #tpu.memory_space<vmem>>, vector<16x128xf32>,
    return
  }
  func.func @transform_0(%arg0: i32) -> (i32, i32) {
    %c0_i32 = arith.constant 0 : i32
    %c0_i32_0 = arith.constant 0 : i32
    return %arg0, %c0_i32 : i32, i32
  }
  func.func @transform_1(%arg0: i32) -> (i32, i32) {
    %c0_i32 = arith.constant 0 : i32
    %c0_i32_0 = arith.constant 0 : i32
    %c0_i32_1 = arith.constant 0 : i32
    return %c0_i32, %c0_i32_0 : i32, i32
  }
  func.func @transform_2(%arg0: i32) -> (i32, i32, i32) {
    %c0_i32 = arith.constant 0 : i32
    %c0_i32_0 = arith.constant 0 : i32
    %c0_i32_1 = arith.constant 0 : i32
    %c0_i32_2 = arith.constant 0 : i32
    return %c0_i32, %c0_i32_0, %c0_i32_1 : i32, i32, i32
  }
  func.func @transform_3(%arg0: i32) -> (i32, i32) {
    %c0_i32 = arith.constant 0 : i32
    %c0_i32_0 = arith.constant 0 : i32
    %c0_i32_1 = arith.constant 0 : i32
    return %c0_i32, %c0_i32_0 : i32, i32
  }
  func.func @transform_4(%arg0: i32) -> (i32, i32) {
    %c0_i32 = arith.constant 0 : i32
    %c0_i32_0 = arith.constant 0 : i32
    return %arg0, %c0_i32 : i32, i32
  }
  func.func @transform_5(%arg0: i32) -> (i32, i32) {
    %c0_i32 = arith.constant 0 : i32
    %c0_i32_0 = arith.constant 0 : i32
    return %arg0, %c0_i32 : i32, i32
  }
}

</mosaic_0001>

<bundles_post_ra>
// kernel: tpu_custom_call.1
= control target key start
LH: loop header
LB: loop body
LE: loop exit
PB: predicated region body
PF: predicated region fallthrough
CT: control target
= control target key end

     0   :  { %10 = vsyncpa [#allocation4], 0  ;;  %s1632_s0 = inlined_call_operand.hbm [shape: bf16[32,256], index: 0, kind: input, shape index: {}]   ;;  %s1633_s1 = inlined_call_operand.vmem [shape: bf16[64,32], index: 1, kind: input, shape index: {}]   ;;  %s1634_s2 = inlined_call_operand.vmem [shape: bf16[4,32,128], index: 2, kind: input, shape index: {}]   ;;  %s1635_s3 = inlined_call_operand.vmem [shape: f32[1,128], index: 3, kind: input, shape index: {}]   ;;  %s1636_s4 = inlined_call_operand.vmem [shape: f32[32,1], index: 4, kind: input, shape index: {}]   ;;  %s1637_s5 = inlined_call_operand.hbm [shape: f32[32,128], index: 5, kind: output, shape index: {}]  }
   0x1   :  { %12 = vsyncpa [#allocation4 + $0x1], 0 }
   0x2   :  { %13 = vsyncpa [#allocation5], 0 }
   0x3   :  { %15 = vsyncpa [#allocation5 + $0x1], 0  ;;  %s1367_s18 = smov 0   ;;  %s1369_s19 = smov 0  }
   0x4   :  { %s1371_s20 = smov 0   ;;  %s1373_s21 = smov 0  }
   0x5 LB: > { %s1388_s22 = sadd.s32 4294967295, %s1328_s21   ;;  %s984_s23 = sadd.s32 4294967294, %s1328_s21   ;;  %s1328_s21 = sphi %s1373_s21, %s1650_s21   ;;  %s1324_s20 = sphi %s1371_s20, %s1649_s20   ;;  %s1320_s19 = sphi %s1369_s19, %s1648_s19   ;;  %s1316_s18 = sphi %s1367_s18, %s1647_s18  }
   0x6   : > { %s1392_s24 = sadd.s32 1, %s1328_s21   ;;  %s28_s25 = sadd.s32 1, %s1324_s20 }
   0x7   : > { %s25_s26 = ssub.s32 %s1328_s21, %s1392_s24  ;;  %p35_p0 = scmp.ne.s32.totalorder %s1324_s20, %s1320_s19 }
   0x8   : > { %p26_p1 = scmp.eq.s32.totalorder %s25_s26, 0  ;;  %p36_p2 = scmp.eq.s32.totalorder %s1328_s21, 0 }
   0x9   : > { %p41_p3 = scmp.ne.s32.totalorder %s1320_s19, %s1316_s18  ;;  %p42_p4 = scmp.eq.s32.totalorder %s1388_s22, 0 }
   0xa   : > { %s1404_s27 = scalar_select %p26_p1, %s1324_s20, %s28_s25  }
   0xb   : > { %p1406_p5 = por %p36_p2, %p35_p0  ;;  %p1410_p6 = por %p42_p4, %p41_p3 }
   0xc   : > { %p154_p7 = scmp.eq.s32.totalorder %s1388_s22, 1  ;;  %p160_p8 = scmp.eq.s32.totalorder %s984_s23, 1 }
   0xd   : > { %p1165_p10 = scmp.lt.s32.totalorder %s1328_s21, 2  ;;  %s189_s7 = sand.u32 1, %s1324_s20  }
   0xe   : > { %p1417_p11 = por %p154_p7, %p35_p0  ;;  %p1421_p12 = por %p160_p8, %p41_p3 }
   0xf   : > { %s1057_s8 = sshll.u32 %s1328_s21, 8  ;;  %s987_s9 = sshll.u32 %s189_s7, 4 }
  0x10   : > { %s1641_s30 = scalar_select %p1417_p11, 1, 0 }
  0x11   : > { %s1642_s6 = scalar_select %p1421_p12, 1, 0 }
  0x12   : > { %s1430_s12 = scalar_lea.hbm %s1632_s0, %s1057_s8  ;;  %s193_s13 = scalar_lea.vmem [#allocation3], %s987_s9 }
  0x13   : > { %s201_s14 = sshll.u32 %s193_s13, 4  ;;  %p1434_p13 = pnand %p1165_p10, %p1406_p5  ;;  %s1438_s14 = int_to_ptr.vmem [resolvable:$true] %s201_s14 }
  0x14   : > { %s1440_s16 = scalar_lea.sflag [#allocation4], %s189_s7  ;;  %s1232_s17 = scalar_lea.hbm %s1430_s12, 256 }
  0x15   : > { %p1233_p0 = scmp.ne.s32.totalorder %s1430_s12, %s1232_s17  ;;  %p1234_p1 = pneg %p1434_p13 }
  0x16   : > { %s1237_s26 = scalar_lea.hbm %s1632_s0, 512  ;;  %p1238_p4 = scmp.lt.u32.totalorder %s1430_s12, %s1632_s0 }
  0x17   : > { %p1235_p2 = pnand %p1234_p1, %p1233_p0  ;;  %p1239_p5 = scmp.lt.u32.totalorder %s1237_s26, %s1232_s17 }
  0x18   : > { %p1241_p8 = scmp.lt.u32.totalorder %s1232_s17, %s1430_s12 }
  0x19   : > { %p1236_p3 = pneg %p1235_p2  ;;  %p1240_p7 = por %p1239_p5, %p1238_p4 }
  0x1b   : > { %p1242_p10 = por %p1241_p8, %p1240_p7 }
  0x1d   : > { %p1243_p9 = pnand %p1242_p10, %p1236_p3 }
  0x1f   : > { %1246 = shalt.err (!%p1243_p9)
}
  0x20   : > { %s1247_s7 = scalar_lea.vmem %s1438_s14, 256  ;;  %s1330_s9 = smov [#allocation3]  }
  0x21   : > { %p1248_p0 = scmp.ne.s32.totalorder %s1438_s14, %s1247_s7  ;;  %s1252_s10 = sshll.u32 %s1330_s9, 4  ;;  %s1253_s10 = int_to_ptr.vmem [resolvable:$false] %s1252_s10 }
  0x22   : > { %s1254_s11 = scalar_lea.vmem %s1253_s10, 512  ;;  %p1255_p11 = scmp.lt.s32.totalorder %s1438_s14, %s1253_s10 }
  0x23   : > { %p1250_p2 = pnand %p1248_p0, %p1234_p1  ;;  %p1256_p4 = scmp.lt.s32.totalorder %s1254_s11, %s1247_s7 }
  0x25   : > { %p1251_p12 = pneg %p1250_p2  ;;  %p1257_p5 = por %p1256_p4, %p1255_p11 }
  0x27   : > { %p1258_p7 = pnand %p1257_p5, %p1251_p12 }
  0x29   : > { %1261 = shalt.err (!%p1258_p7)
}
  0x2a   : > { %s1331_s13 = smov 128   ;;  %s1332_s17 = smov 8  }
  0x2b   : > { %1160 = dma.hbm_to_vmem [thread:$0]  (!%p1434_p13), %s1430_s12, 256, %s1438_s14, %s1440_s16, %s1331_s13, %s1331_s13, %s1332_s17  }
  0x2c   : > { %p991_p9 = scmp.ge.s32.totalorder %s1328_s21, 1  ;;  %p218_p1 = scmp.lt.s32.totalorder %s1328_s21, 3 }
  0x2e   : > { %p219_p3 = pnand %p991_p9, %p218_p1 }
  0x2f   : > { %s1471_s23 = sand.u32 (!%p219_p3), 1, %s1320_s19  }
  0x30   : > { %222 = sbr.rel (%p219_p3) target bundleno = 568 (0x238), region = 40  ;;  %s992_s25 = sshll.u32 (!%p219_p3), %s1471_s23, 4 }
  0x31   : > { %s225_s26 = scalar_lea.sflag (!%p219_p3), [#allocation4], %s1471_s23  ;;  %s1477_s28 = scalar_lea.vmem (!%p219_p3), [#allocation3], %s992_s25 }
  0x37   : > { %1307 = dma.done.wait (%p1410_p6), %s225_s26, 256  }
  0x38   : > { %1309 = vsyncadd (%p1410_p6), %s225_s26, 4294967040  ;;  %v1205_v0 = vld [vmem:[%s1634_s2] sm:$0xff]   ;;  %v1207_v2 = vld [vmem:[%s1634_s2 + $0x8] sm:$0xff]   ;;  %vm313_vm0 = vcmask 261120   ;;  %s994_s11 = sshll.u32 %s1388_s22, 1  ;;  %v1333_v25 = vmov 0  }
  0x39   : > { %v1206_v1 = vld [vmem:[%s1634_s2 + $0x20] sm:$0xff]   ;;  %1105 = vmatprep.subr.bf16.mxu1 %v1205_v0  ;;  %v1208_v3 = vld [vmem:[%s1634_s2 + $0x28] sm:$0xff]   ;;  %v1212_v7 = vld [vmem:[%s1634_s2 + $0x10] sm:$0xff]   ;;  %1204 = vset.pattern.permute.xlu0 %v1333_v25  ;;  %p262_p6 = scmp.lt.s32.totalorder %s994_s11, 3  ;;  %s259_s16 = scalar_lea.vmem [#allocation6], %s992_s25 }
  0x3a   : > { %1129 = vmatprep.subr.bf16.mxu0 %v1206_v1  ;;  %1106 = vmatpush3.bf16.msra.mxu1 %v1205_v0  ;;  %v1209_v4 = vld [vmem:[%s1633_s1] sm:$0xff]   ;;  %v1211_v6 = vld [vmem:[%s1633_s1 + $0x8] sm:$0xff]   ;;  %v1214_v9 = vld [vmem:[%s1633_s1 + $0x10] sm:$0xff]   ;;  %s1058_s8 = sshll.u32 %s1388_s22, 8  ;;  %s886_s25 = scalar_lea.sflag [#allocation5], %s1471_s23 }
  0x3b   : > { %1130 = vmatpush3.bf16.msra.mxu0 %v1206_v1  ;;  %1107 = vmatprep.subr.bf16.mxu1 %v1207_v2  ;;  %v1210_v5 = vld [vmem:[%s1633_s1] sm:$0xff]   ;;  %v1213_v8 = vld [vmem:[%s1633_s1 + $0x8] sm:$0xff]   ;;  %v1215_v10 = vld [vmem:[%s1633_s1 + $0x10] sm:$0xff]   ;;  %s1652_s11 = smov (!%p262_p6, %s994_s11), 3  ;;  %s1588_s10 = scalar_lea.hbm %s1637_s5, %s1058_s8 }
  0x3c   : > { %1131 = vmatprep.subr.bf16.mxu0 %v1208_v3  ;;  %1109 = vmatprep.mubr.msk.bf16.mxu1 %vm313_vm0, %v1209_v4  ;;  %v1217_v11 = vld [vmem:[%s1634_s2 + $0x18] sm:$0xff]   ;;  %v1219_v14 = vld [vmem:[%s1633_s1] sm:$0xff]   ;;  %v1221_v15 = vld [vmem:[%s1634_s2 + $0x30] sm:$0xff]   ;;  %s995_s13 = sshll.u32 %s1652_s11, 3  ;;  %p1644_p12 = scmp.ne.s32.totalorder %s1641_s30, 0 }
  0x3d   : > { %1133 = vmatprep.mubr.msk.bf16.mxu0 %vm313_vm0, %v1210_v5  ;;  %v1216_v12 = vld [vmem:[%s1633_s1 + $0x18] sm:$0xff]   ;;  %v1220_v16 = vld [vmem:[%s1633_s1 + $0x8] sm:$0xff]   ;;  %v1222_v17 = vld [vmem:[%s1633_s1 + $0x10] sm:$0xff]   ;;  %s265_s12 = scalar_lea.vmem %s1636_s4, %s995_s13  ;;  %s1334_s22 = smov [#allocation6]  }
  0x3e   : > { %1108 = vmatpush3.bf16.msra.mxu1 %v1207_v2  ;;  %v1218_v13 = vld [vmem:[%s1633_s1 + $0x18] sm:$0xff]   ;;  %v1225_v20 = vld [vmem:[%s1633_s1] sm:$0xff]   ;;  %v1226_v21 = vld [vmem:[%s1633_s1 + $0x8] sm:$0xff]   ;;  %s1266_s11 = sshll.u32 %s1334_s22, 4  ;;  %s1267_s11 = int_to_ptr.vmem [resolvable:$false] %s1266_s11 }
  0x3f   : > { %1132 = vmatpush3.bf16.msra.mxu0 %v1208_v3  ;;  %1117 = vmatprep.subr.bf16.mxu1 %v1212_v7  ;;  %v1224_v18 = vld [vmem:[%s1634_s2 + $0x38] sm:$0xff]   ;;  %v1227_v22 = vld [vmem:[%s1633_s1 + $0x10] sm:$0xff]   ;;  %v858_v26 = vld [vmem:[%s265_s12] sm:$0xff]  ;;  %s1268_s13 = scalar_lea.vmem %s1267_s11, 512 }
  0x40   : > { %v1223_v19 = vld [vmem:[%s1633_s1 + $0x18] sm:$0xff]   ;;  %862 = vperm.xlu0 %1204, %v858_v26   ;;  %v859_v27 = vld [vmem:[%s265_s12 + $0x8] sm:$0xff] }
  0x41   : > { %1110 = vmatmul.mubr.msk.bf16.vlgmr.msra.gmra.mrb[0].mxu1 %vm313_vm0, %v1211_v6  ;;  %v1228_v23 = vld [vmem:[%s1633_s1 + $0x18] sm:$0xff]  }
  0x42   : > { %1134 = vmatmul.mubr.msk.bf16.vlgmr.msra.gmra.mrb[0].mxu0 %vm313_vm0, %v1213_v8  ;;  %1118 = vmatpush3.bf16.msra.mxu1 %v1212_v7  ;;  %v1231_v24 = vld [vmem:[%s1477_s28 + $0x4] ss:$8 sps:$4 sm:$0xff]  }
  0x43   : > { %1113 = vmatprep.mubr.msk.bf16.mxu1 %vm313_vm0, %v1214_v9  ;;  %1137 = vmatprep.mubr.msk.bf16.mxu0 %vm313_vm0, %v1215_v10 }
  0x44   : > { %1119 = vmatprep.subr.bf16.mxu1 %v1217_v11  ;;  %867 = vperm.xlu0 %1204, %v859_v27  }
  0x46   : > { %1120 = vmatpush3.bf16.msra.mxu1 %v1217_v11 }
  0x47   : > { %1141 = vmatprep.subr.bf16.mxu1 %v1221_v15 }
  0x49   : > { %1114 = vmatmul.mubr.msk.bf16.gmra.mrb[4].mxu1 %vm313_vm0, %v1216_v12  ;;  %v1229_v12 = vld [vmem:[%s1477_s28] ss:$8 sps:$4 sm:$0xff]   ;;  %s899_s28 = sshll.u32 %s259_s16, 4  ;;  %s1583_s28 = int_to_ptr.vmem [resolvable:$true] %s899_s28 }
  0x4a   : > { %1138 = vmatmul.mubr.msk.bf16.gmra.mrb[4].mxu0 %vm313_vm0, %v1218_v13  ;;  %1121 = vmatprep.mubr.msk.bf16.mxu1 %vm313_vm0, %v1219_v14  ;;  %s1262_s29 = scalar_lea.vmem %s1583_s28, 256  ;;  %p1269_p10 = scmp.lt.s32.totalorder %s1583_s28, %s1267_s11 }
  0x4b   : > { %849 = vmatprep.mubr.bf16.mxu0 %v1231_v24  ;;  %p1263_p11 = scmp.ne.s32.totalorder %s1583_s28, %s1262_s29  ;;  %p1270_p0 = scmp.lt.s32.totalorder %s1268_s13, %s1262_s29 }
  0x4d   : > { %p1264_p13 = pnand %p1263_p11, %p1644_p12  ;;  %p1271_p2 = por %p1270_p0, %p1269_p10 }
  0x4f   : > { %p1265_p8 = pneg %p1264_p13 }
  0x51   : > { %1122 = vmatmul.mubr.msk.bf16.vlgmr.msra.gmra.mrb[8].mxu1 %vm313_vm0, %v1220_v16  ;;  %p1272_p4 = pnand %p1271_p2, %p1265_p8 }
  0x52   : > { %1142 = vmatpush3.bf16.msra.mxu1 %v1221_v15  ;;  %1125 = vmatprep.mubr.msk.bf16.mxu1 %vm313_vm0, %v1222_v17 }
  0x53   : > { %1143 = vmatprep.subr.bf16.mxu1 %v1224_v18 }
  0x56   : > { %1144 = vmatpush3.bf16.msra.mxu1 %v1224_v18  ;;  %v1050_v18 = vld [vmem:[%s1635_s3] ss:$0 sm:$0xff] }
  0x59   : > { %1126 = vmatmul.mubr.msk.bf16.gmra.mrb[12].mxu1 %vm313_vm0, %v1223_v19 }
  0x5a   : > { %1145 = vmatprep.mubr.msk.bf16.mxu1 %vm313_vm0, %v1225_v20 }
  0x61   : > { %1146 = vmatmul.mubr.msk.bf16.vlgmr.msra.gmra.mrb[16].mxu1 %vm313_vm0, %v1226_v21 }
  0x62   : > { %1149 = vmatprep.mubr.msk.bf16.mxu1 %vm313_vm0, %v1227_v22 }
  0x69   : > { %1150 = vmatmul.mubr.msk.bf16.gmra.mrb[20].mxu1 %vm313_vm0, %v1228_v23 }
  0xbf   : > { %v863_v13 = vpop.permute.xlu0 %862 }
  0xc3   : > { %v868_v22 = vpop.permute.xlu0 %867 }
 0x114   : > { %v1111_v28 = vpop.f32.mrb[0].mxu1 }
 0x115   : > { %v1135_v29 = vpop.f32.mrb[0].mxu0  ;;  %v360_v30 = vpop.f32.mrb[1].mxu1 }
 0x116   : > { %v620_v31 = vpop.f32.mrb[1].mxu0  ;;  %v1112_v32 = vpop.f32.mrb[2].mxu1 }
 0x117   : > { %v392_v33 = vpack.c.bf16 %v1112_v32, %v1111_v28  ;;  %v1136_v34 = vpop.f32.mrb[2].mxu0  ;;  %v363_v35 = vpop.f32.mrb[3].mxu1 }
 0x118   : > { %v652_v36 = vpack.c.bf16 %v1136_v34, %v1135_v29  ;;  %v391_v37 = vpack.c.bf16 %v363_v35, %v360_v30  ;;  %v623_v38 = vpop.f32.mrb[3].mxu0 }
 0x119   : > { %v651_v39 = vpack.c.bf16 %v623_v38, %v620_v31 }
 0x11b   : > { %1083 = vmatprep.subr.bf16.mxu0 %v651_v39 }
 0x11c   : > { %1084 = vmatpush3.bf16.msra.mxu0 %v391_v37  ;;  %v1115_v40 = vpop.f32.mrb[4].mxu1 }
 0x11d   : > { %v1139_v41 = vpop.f32.mrb[4].mxu0  ;;  %v376_v42 = vpop.f32.mrb[5].mxu1  ;;  %1085 = vmatprep.subr.bf16.mxu0 %v652_v36 }
 0x11e   : > { %v636_v43 = vpop.f32.mrb[5].mxu0  ;;  %v1116_v44 = vpop.f32.mrb[6].mxu1 }
 0x11f   : > { %v394_v45 = vpack.c.bf16 %v1116_v44, %v1115_v40  ;;  %v1140_v46 = vpop.f32.mrb[6].mxu0  ;;  %v379_v47 = vpop.f32.mrb[7].mxu1 }
 0x120   : > { %v654_v48 = vpack.c.bf16 %v1140_v46, %v1139_v41  ;;  %v393_v49 = vpack.c.bf16 %v379_v47, %v376_v42  ;;  %v639_v50 = vpop.f32.mrb[7].mxu0  ;;  %1086 = vmatpush3.bf16.msra.mxu0 %v392_v33 }
 0x121   : > { %v653_v51 = vpack.c.bf16 %v639_v50, %v636_v43 }
 0x123   : > { %1087 = vmatprep.subr.bf16.mxu0 %v653_v51 }
 0x124   : > { %1088 = vmatpush3.bf16.msra.mxu0 %v393_v49  ;;  %v1123_v52 = vpop.f32.mrb[8].mxu1 }
 0x125   : > { %v490_v53 = vpop.f32.mrb[9].mxu1  ;;  %1089 = vmatprep.subr.bf16.mxu0 %v654_v48 }
 0x126   : > { %v1124_v54 = vpop.f32.mrb[10].mxu1 }
 0x127   : > { %v522_v55 = vpack.c.bf16 %v1124_v54, %v1123_v52  ;;  %v493_v56 = vpop.f32.mrb[11].mxu1 }
 0x128   : > { %v521_v57 = vpack.c.bf16 %v493_v56, %v490_v53  ;;  %1090 = vmatpush3.bf16.msra.mxu0 %v394_v45 }
 0x12c   : > { %v1127_v58 = vpop.f32.mrb[12].mxu1 }
 0x12d   : > { %v506_v59 = vpop.f32.mrb[13].mxu1 }
 0x12e   : > { %v1128_v60 = vpop.f32.mrb[14].mxu1 }
 0x12f   : > { %v524_v61 = vpack.c.bf16 %v1128_v60, %v1127_v58  ;;  %v509_v62 = vpop.f32.mrb[15].mxu1 }
 0x130   : > { %v523_v63 = vpack.c.bf16 %v509_v62, %v506_v59 }
 0x134   : > { %v1147_v0 = vpop.f32.mrb[16].mxu1 }
 0x135   : > { %v750_v1 = vpop.f32.mrb[17].mxu1 }
 0x136   : > { %v1148_v2 = vpop.f32.mrb[18].mxu1 }
 0x137   : > { %v782_v3 = vpack.c.bf16 %v1148_v2, %v1147_v0  ;;  %v753_v4 = vpop.f32.mrb[19].mxu1 }
 0x138   : > { %v781_v5 = vpack.c.bf16 %v753_v4, %v750_v1 }
 0x13a   : > { %1091 = vmatprep.subr.bf16.mxu0 %v781_v5 }
 0x13b   : > { %1092 = vmatpush3.bf16.msra.mxu0 %v521_v57 }
 0x13c   : > { %v1151_v6 = vpop.f32.mrb[20].mxu1  ;;  %1093 = vmatprep.subr.bf16.mxu0 %v782_v3 }
 0x13d   : > { %v766_v7 = vpop.f32.mrb[21].mxu1 }
 0x13e   : > { %v1152_v8 = vpop.f32.mrb[22].mxu1 }
 0x13f   : > { %v784_v9 = vpack.c.bf16 %v1152_v8, %v1151_v6  ;;  %v769_v10 = vpop.f32.mrb[23].mxu1  ;;  %1094 = vmatpush3.bf16.msra.mxu0 %v522_v55 }
 0x140   : > { %v783_v11 = vpack.c.bf16 %v769_v10, %v766_v7 }
 0x142   : > { %1095 = vmatprep.subr.bf16.mxu0 %v783_v11 }
 0x143   : > { %1096 = vmatpush3.bf16.msra.mxu0 %v523_v63 }
 0x144   : > { %1097 = vmatprep.subr.bf16.mxu0 %v784_v9 }
 0x147   : > { %1098 = vmatpush3.bf16.msra.mxu0 %v524_v61 }
 0x14a   : > { %850 = vmatmul.mubr.bf16.vlgmr.msra.gmra.mrb[8].mxu0 %v1229_v12 }
 0x21d   : > { %v1099_v14 = vpop.f32.mrb[8].mxu0 }
 0x21e   : > { %v1100_v15 = vpop.f32.mrb[9].mxu0 }
 0x21f   : > { %v1101_v16 = vadd.f32 %v1100_v15, %v1099_v14  ;;  %v1102_v17 = vpop.f32.mrb[10].mxu0 }
 0x220   : > { %v1103_v19 = vpop.f32.mrb[11].mxu0 }
 0x221   : > { %v870_v20 = vmul.f32 %v1101_v16, %v863_v13  ;;  %v1104_v21 = vadd.f32 %v1103_v19, %v1102_v17 }
 0x223   : > { %v879_v23 = vadd.f32 %v1050_v18, %v870_v20  ;;  %v871_v24 = vmul.f32 %v1104_v21, %v868_v22 }
 0x225   : > { %v881_v25 = vmax.f32 %v879_v23, 0.0  ;;  %v880_v26 = vadd.f32 %v1050_v18, %v871_v24 }
 0x227   : > { %883 = vst [vmem:[%s259_s16] sm:$0xff] %v881_v25  ;;  %v882_v27 = vmax.f32 %v880_v26, 0.0 }
 0x229   : > { %884 = vst [vmem:[%s259_s16 + $0x8] sm:$0xff] %v882_v27 }
 0x22a   : > { %1275 = shalt.err (!%p1272_p4)
}
 0x22b   : > { %s1276_s17 = scalar_lea.hbm %s1588_s10, 256  ;;  %s1280_s14 = scalar_lea.hbm %s1637_s5, 512 }
 0x22c   : > { %p1277_p5 = scmp.ne.s32.totalorder %s1588_s10, %s1276_s17  ;;  %p1281_p1 = scmp.lt.u32.totalorder %s1588_s10, %s1637_s5 }
 0x22d   : > { %p1282_p3 = scmp.lt.u32.totalorder %s1280_s14, %s1276_s17  ;;  %p1284_p11 = scmp.lt.u32.totalorder %s1276_s17, %s1588_s10 }
 0x22e   : > { %p1278_p7 = pnand %p1277_p5, %p1644_p12 }
 0x22f   : > { %p1283_p6 = por %p1282_p3, %p1281_p1 }
 0x230   : > { %p1279_p9 = pneg %p1278_p7 }
 0x231   : > { %p1285_p13 = por %p1284_p11, %p1283_p6 }
 0x233   : > { %p1286_p8 = pnand %p1285_p13, %p1279_p9 }
 0x235   : > { %1289 = shalt.err (!%p1286_p8)
}
 0x236   : > { %s1335_s8 = smov 128   ;;  %s1336_s7 = smov 8  }
 0x237   : > { %1155 = dma.vmem_to_hbm [thread:$0]  (%p1644_p12), %s1583_s28, 256, %s1588_s10, %s886_s25, %s1335_s8, %s1335_s8, %s1336_s7  }
 0x238 PF: > { %s914_s9 = sand.u32 1, %s1316_s18   ;;  %p1645_p10 = scmp.ne.s32.totalorder %s1642_s6, 0 }
 0x239   : > { %p1646_p0 = scmp.ge.s32.totalorder %s1328_s21, 2  ;;  %s915_s29 = scalar_lea.sflag [#allocation5], %s914_s9 }
 0x23b   : > { %p1162_p2 = pnand %p1646_p0, %p1645_p10 }
 0x23d   : > { %1311 = dma.done.wait (!%p1162_p2), %s915_s29, 256  }
 0x23e   : > { %1313 = vsyncadd (!%p1162_p2), %s915_s29, 4294967040  ;;  %p18_p4 = scmp.ge.s32.totalorder %s1392_s24, 4   ;;  %s1647_s18 = smov %s1320_s19 }
 0x23f   : > { %s1648_s19 = smov %s1324_s20  ;;  %s1649_s20 = smov %s1404_s27 }
 0x240   : > { %s1650_s21 = smov %s1392_s24  ;;  %20 = sbr.rel (!%p18_p4) target bundleno = 5 (0x5), region = 91 }
 0x247   :  { %920 = vsyncpa [#allocation4], 1 }
 0x248   :  { %922 = vsyncpa [#allocation4 + $0x1], 1 }
 0x249   :  { %923 = vsyncpa [#allocation5], 1 }
 0x24a   :  { %925 = vsyncpa [#allocation5 + $0x1], 1 }

</bundles_post_ra>
